<compile_context>
chip_gen: v7x
topology: tpu7x:2x2x1
jax: 0.10.0
libtpu: 0.0.40
codegen_flags: <defaults>
</compile_context>

<pallas_src>
import functools

import jax
import jax.numpy as jnp
from jax import lax
from jax.experimental import pallas as pl
from jax.experimental.pallas import tpu as pltpu


def _cdiv(a, b):
    return -(-a // b)


def _round_up(x, m):
    return _cdiv(x, m) * m


def _i32(v):
    """Python int -> wrapped signed int32 constant."""
    v &= 0xFFFFFFFF
    if v >= 1 << 31:
        v -= 1 << 32
    return jnp.int32(v)


def _layer_key(seed, layer):
    """Mix the seed and layer index into a per-layer hash key (wrapping int32 math)."""
    return seed * _i32(0xB5297A4D) + _i32((layer + 1) * 0x9E3779B9)


def _keep_mask(shape, key, row_off, col_off, drop_threshold):
    """Counter-based Bernoulli keep mask, P(drop) = drop_threshold / 2^32.

    Portable (plain integer VPU ops, no TPU-only PRNG primitives), so it runs both
    under Mosaic and under interpret mode.  The mask depends only on
    (seed, layer, global row, global col) -> invariant to the chosen batch tile.
    """
    r = lax.broadcasted_iota(jnp.int32, shape, 0) + row_off
    c = lax.broadcasted_iota(jnp.int32, shape, 1) + col_off
    h = (r * _i32(0x9E3779B1) + c * _i32(0x85EBCA77) + key).astype(jnp.uint32)
    # splitmix32-style finalizer.
    h = h ^ (h >> jnp.uint32(16))
    h = h * jnp.uint32(0x7FEB352D)
    h = h ^ (h >> jnp.uint32(15))
    h = h * jnp.uint32(0x846CA68B)
    h = h ^ (h >> jnp.uint32(16))
    return h >= jnp.uint32(drop_threshold)


def _mlp_kernel(seed_ref, x_ref, *refs, num_layers, drop_threshold, use_dropout,
                compute_dtype):
    """Fused MLP with transposed (lane-dense) activations: g_{i+1} = relu(W_i @ g_i + b_i)."""
    w_refs = refs[:num_layers]
    b_refs = refs[num_layers:2 * num_layers]
    o_ref = refs[2 * num_layers]

    tm = x_ref.shape[0]
    if use_dropout:
        seed = seed_ref[0]
        batch0 = pl.program_id(0) * tm          # global batch offset of this tile

    # Layer 0: dropout on the natural-layout (tm, d0) x tile, then W0 @ x^T.
    # dot_general contracts both operands' LAST dims (the standard A @ B^T MXU
    # pattern), so moving into the transposed (d1, tm) layout costs no standalone
    # transpose and the batch tile stays on the lane (minor) dim from here on.
    x = x_ref[...]
    if use_dropout:
        keep = _keep_mask(x.shape, _layer_key(seed, 0), batch0, 0, drop_threshold)
        x = jnp.where(keep, x, jnp.zeros_like(x))
    g = lax.dot_general(w_refs[0][...], x.astype(compute_dtype),
                        dimension_numbers=(((1,), (1,)), ((), ())),
                        preferred_element_type=jnp.float32)          # (d1, tm), f32 acc
    g = g + b_refs[0][...]                                           # (d1, 1) bias

    # Layers 1..L-1: fused (ReLU -> Dropout) then W_i @ g + b_i.
    # relu-then-dropout == dropping ReLU-negative entries inside the same select
    # (a ReLU zero stays zero whether kept or dropped).
    for li in range(1, num_layers):
        if use_dropout:
            keep = _keep_mask(g.shape, _layer_key(seed, li), 0, batch0, drop_threshold)
            keep = jnp.logical_and(keep, g > 0.0)
            g = jnp.where(keep, g, 0.0)
        else:
            g = jnp.maximum(g, 0.0)
        g = jnp.dot(w_refs[li][...], g.astype(compute_dtype),
                    preferred_element_type=jnp.float32)
        g = g + b_refs[li][...]

    o_ref[...] = g.astype(o_ref.dtype)          # (d_out, tm): lane-dense store / DMA


def _pick_tile(M, tm_max=4096, min_tiles=2):
    """Choose (tile_rows, padded_batch, num_tiles).

    - Big 128-aligned tiles amortize the ~0.35us per-grid-step overhead.
    - >= min_tiles tiles when the batch is big enough so v7x's two TensorCores
      both get work (grid axis is "parallel").
    - Tiles are balanced (cdiv) so awkward batch sizes don't pad a whole tile.
    """
    M8 = _round_up(max(M, 1), 8)
    if M8 < min_tiles * 128:
        return M8, M8, 1                         # tiny batch: one full-extent tile
    n = max(min_tiles, _cdiv(M8, tm_max))
    tile = min(_round_up(_cdiv(M8, n), 128), _round_up(tm_max, 128))
    n = _cdiv(M8, tile)
    return tile, tile * n, n


def full_expert_forward(x, weights, biases, *, dropout_rate=0.0, training=False,
                        seed=0, tm=4096, compute_dtype=jnp.bfloat16):
    """Forward pass of fullExpert.

    x:       (batch, dims[0])
    weights: list of (dims[i+1], dims[i])   -- native PyTorch nn.Linear layout
    biases:  list of (dims[i+1],)
    compute_dtype: MXU operand dtype (bf16 default -> native MXU path, half the
                   weight DMA bytes).  Accumulation is always f32.
    """
    M, d0 = x.shape
    num_layers = len(weights)
    d_out = weights[-1].shape[0]

    p = float(dropout_rate)
    use_dropout = bool(training) and p > 0.0
    drop_threshold = min(int(round(p * (1 << 32))), (1 << 32) - 1)   # P(drop)=p in u32 space

    # One-time parameter prep outside the kernel:
    #  * weights -> compute_dtype (bf16 => native MXU path),
    #  * fold dropout's 1/(1-p) rescale into the weights: dropout precedes every
    #    Linear, so W @ (mask*g/(1-p)) == (W/(1-p)) @ (mask*g); the kernel's dropout
    #    is then a pure select.
    w_scale = (1.0 / (1.0 - p)) if (use_dropout and p < 1.0) else 1.0
    weights_k = [(jnp.asarray(w, jnp.float32) * w_scale).astype(compute_dtype)
                 for w in weights]
    biases_col = [jnp.asarray(b, jnp.float32).reshape(-1, 1) for b in biases]

    tm_eff, M_pad, n_tiles = _pick_tile(M, tm_max=int(tm))
    xk = x if M_pad == M else jnp.pad(x, ((0, M_pad - M), (0, 0)))
    seed_arr = jnp.asarray([seed], dtype=jnp.int32)      # SMEM scalar: no recompile per seed

    # x read in natural layout -> fully contiguous HBM DMA (no wrapper transpose);
    # weights/biases use full, grid-invariant blocks (fetched once).
    in_specs = [pl.BlockSpec((tm_eff, d0), lambda i, s: (i, 0))]
    for w in weights_k:
        in_specs.append(pl.BlockSpec(w.shape, lambda i, s: (0, 0)))
    for b in biases_col:
        in_specs.append(pl.BlockSpec(b.shape, lambda i, s: (0, 0)))
    # Output kept in the kernel's transposed (d_out, M_pad) layout -> the lane dim of
    # every output block is the 128-aligned batch tile (dense stores / DMA).
    out_spec = pl.BlockSpec((d_out, tm_eff), lambda i, s: (0, i))

    kernel = functools.partial(_mlp_kernel, num_layers=num_layers,
                               drop_threshold=drop_threshold,
                               use_dropout=use_dropout, compute_dtype=compute_dtype)

    flops = 2 * M_pad * sum(w.shape[0] * w.shape[1] for w in weights)
    bytes_accessed = (
        M_pad * d0 * x.dtype.itemsize
        + sum(int(w.size) * w.dtype.itemsize for w in weights_k)
        + sum(int(b.size) * 4 for b in biases_col)
        + M_pad * d_out * x.dtype.itemsize)

    out_t = pl.pallas_call(
        kernel,
        out_shape=jax.ShapeDtypeStruct((d_out, M_pad), x.dtype),
        grid_spec=pltpu.PrefetchScalarGridSpec(
            num_scalar_prefetch=1,
            grid=(n_tiles,),
            in_specs=in_specs,
            out_specs=out_spec,
        ),
        compiler_params=pltpu.CompilerParams(
            dimension_semantics=("parallel",)),
        cost_estimate=pl.CostEstimate(flops=int(flops), transcendentals=0,
                                      bytes_accessed=int(bytes_accessed)),
    )(seed_arr, xk, *weights_k, *biases_col)

    # A consumer that accepts (features, batch) can use out_t directly; otherwise a
    # tiny (d_out, M) XLA transpose hands back the module's (batch, d_out) layout.
    return jnp.transpose(out_t)[:M]


def init_full_expert_params(key, dims):
    """nn.Linear-style init: U(-1/sqrt(fan_in), 1/sqrt(fan_in)); weights in (out, in)."""
    weights, biases = [], []
    for i in range(len(dims) - 1):
        fan_in, fan_out = dims[i], dims[i + 1]
        key, kw, kb = jax.random.split(key, 3)
        bound = 1.0 / (fan_in ** 0.5)
        weights.append(jax.random.uniform(kw, (fan_out, fan_in), jnp.float32, -bound, bound))
        biases.append(jax.random.uniform(kb, (fan_out,), jnp.float32, -bound, bound))
    return weights, biases


def _reference_forward(x, weights, biases):
    """Pure-JAX reference (eval mode: dropout is identity)."""
    h = x.astype(jnp.float32)
    n = len(weights)
    for i, (w, b) in enumerate(zip(weights, biases)):
        h = h @ w.T + b
        if i < n - 1:
            h = jnp.maximum(h, 0.0)
    return h


if __name__ == "__main__":
    dims = [32, 64, 48, 16]        # fullExpert(dims, dropout_rate)
    dropout_rate = 0.1
    batch = 16

    key = jax.random.PRNGKey(0)
    key, kx = jax.random.split(key)
    x = jax.random.normal(kx, (batch, dims[0]), jnp.float32)
    weights, biases = init_full_expert_params(key, dims)
    ref = _reference_forward(x, weights, biases)

    # Eval mode, f32 compute: tight match vs pure-JAX reference.
    out32 = full_expert_forward(x, weights, biases, dropout_rate=dropout_rate,
                                training=False, compute_dtype=jnp.float32)
    out32 = jax.block_until_ready(out32)
    assert out32.shape == (batch, dims[-1])
    assert jnp.allclose(out32, ref, atol=1e-4, rtol=1e-4), "f32 path mismatch"

    # Eval mode, default bf16 MXU path: looser tolerance (bf16 operand rounding).
    out_bf = full_expert_forward(x, weights, biases, dropout_rate=dropout_rate,
                                 training=False)
    out_bf = jax.block_until_ready(out_bf)
    assert out_bf.shape == (batch, dims[-1])
    assert jnp.allclose(out_bf, ref, atol=5e-2, rtol=5e-2), "bf16 path mismatch"

    # Multi-tile + padded-tail path (grid > 1, 128-aligned tiles).
    x2 = jax.random.normal(jax.random.PRNGKey(1), (300, dims[0]), jnp.float32)
    out2 = full_expert_forward(x2, weights, biases, dropout_rate=dropout_rate,
                               training=False, tm=128, compute_dtype=jnp.float32)
    out2 = jax.block_until_ready(out2)
    ref2 = _reference_forward(x2, weights, biases)
    assert out2.shape == (300, dims[-1])
    assert jnp.allclose(out2, ref2, atol=1e-4, rtol=1e-4), "multi-tile mismatch"

    # Training mode: exercises the fused hash-dropout + ReLU select path.
    out_tr = full_expert_forward(x, weights, biases, dropout_rate=dropout_rate,
                                 training=True, seed=1234)
    out_tr = jax.block_until_ready(out_tr)
    assert out_tr.shape == (batch, dims[-1])
    assert bool(jnp.all(jnp.isfinite(out_tr)))
    assert not jnp.allclose(out_tr, out_bf), "dropout produced no change"

    print("KERNEL_OK")
</pallas_src>

<mosaic_0001>
module attributes {stable_mosaic.version = 11 : i64} {
  func.func @_mlp_kernel(%arg0: i32, %arg1: memref<1xi32, #tpu.memory_space<smem>>, %arg2: memref<16x32xf32, #tpu.memory_space<vmem>>, %arg3: memref<64x32xf32, #tpu.memory_space<vmem>>, %arg4: memref<48x64xf32, #tpu.memory_space<vmem>>, %arg5: memref<16x48xf32, #tpu.memory_space<vmem>>, %arg6: memref<64x1xf32, #tpu.memory_space<vmem>>, %arg7: memref<48x1xf32, #tpu.memory_space<vmem>>, %arg8: memref<16x1xf32, #tpu.memory_space<vmem>>, %arg9: memref<16x16xf32, #tpu.memory_space<vmem>>) attributes {dimension_semantics = [#tpu.dimension_semantics<parallel>], iteration_bounds = array<i64: 1>, scalar_prefetch = 1 : i64, scratch_operands = 0 : i64, tpu.core_type = #tpu.core_type<tc>, window_params = [{transform_indices = @transform_0, window_bounds = array<i64: 16, 32>}, {pipeline_mode = #tpu.pipeline_mode<synchronous>, transform_indices = @transform_1, window_bounds = array<i64: 64, 32>}, {pipeline_mode = #tpu.pipeline_mode<synchronous>, transform_indices = @transform_2, window_bounds = array<i64: 48, 64>}, {pipeline_mode = #tpu.pipeline_mode<synchronous>, transform_indices = @transform_3, window_bounds = array<i64: 16, 48>}, {pipeline_mode = #tpu.pipeline_mode<synchronous>, transform_indices = @transform_4, window_bounds = array<i64: 64, 1>}, {pipeline_mode = #tpu.pipeline_mode<synchronous>, transform_indices = @transform_5, window_bounds = array<i64: 48, 1>}, {pipeline_mode = #tpu.pipeline_mode<synchronous>, transform_indices = @transform_6, window_bounds = array<i64: 16, 1>}, {transform_indices = @transform_7, window_bounds = array<i64: 16, 16>}]} {
    %c0 = arith.constant 0 : index
    %c0_0 = arith.constant 0 : index
    %0 = vector.load %arg2[%c0, %c0_0] : memref<16x32xf32, #tpu.memory_space<vmem>>, vector<16x32xf32>
    %c0_1 = arith.constant 0 : index
    %c0_2 = arith.constant 0 : index
    %1 = vector.load %arg3[%c0_1, %c0_2] : memref<64x32xf32, #tpu.memory_space<vmem>>, vector<64x32xf32>
    %cst = arith.constant dense<0.000000e+00> : vector<64x16xf32>
    %2 = tpu.matmul %1, %0, %cst {dimension_numbers = #tpu.dot_dimension_numbers<[1], [1], [0], [0], [0, 0, 1, 0], [], []>} : vector<64x32xf32>, vector<16x32xf32>, vector<64x16xf32> -> vector<64x16xf32>
    %c0_3 = arith.constant 0 : index
    %c0_4 = arith.constant 0 : index
    %3 = vector.load %arg6[%c0_3, %c0_4] : memref<64x1xf32, #tpu.memory_space<vmem>>, vector<64x1xf32>
    %4 = vector.broadcast %3 : vector<64x1xf32> to vector<64x16xf32>
    %5 = arith.addf %2, %4 : vector<64x16xf32>
    %cst_5 = arith.constant 0.000000e+00 : f32
    %6 = vector.broadcast %cst_5 : f32 to vector<64x16xf32>
    %7 = arith.maximumf %5, %6 : vector<64x16xf32>
    %c0_6 = arith.constant 0 : index
    %c0_7 = arith.constant 0 : index
    %8 = vector.load %arg4[%c0_6, %c0_7] : memref<48x64xf32, #tpu.memory_space<vmem>>, vector<48x64xf32>
    %cst_8 = arith.constant dense<0.000000e+00> : vector<48x16xf32>
    %9 = tpu.matmul %8, %7, %cst_8 {dimension_numbers = #tpu.dot_dimension_numbers<[1], [0], [0], [1], [0, 0, 1, 1], [], []>} : vector<48x64xf32>, vector<64x16xf32>, vector<48x16xf32> -> vector<48x16xf32>
    %c0_9 = arith.constant 0 : index
    %c0_10 = arith.constant 0 : index
    %10 = vector.load %arg7[%c0_9, %c0_10] : memref<48x1xf32, #tpu.memory_space<vmem>>, vector<48x1xf32>
    %11 = vector.broadcast %10 : vector<48x1xf32> to vector<48x16xf32>
    %12 = arith.addf %9, %11 : vector<48x16xf32>
    %cst_11 = arith.constant 0.000000e+00 : f32
    %13 = vector.broadcast %cst_11 : f32 to vector<48x16xf32>
    %14 = arith.maximumf %12, %13 : vector<48x16xf32>
    %c0_12 = arith.constant 0 : index
    %c0_13 = arith.constant 0 : index
    %15 = vector.load %arg5[%c0_12, %c0_13] : memref<16x48xf32, #tpu.memory_space<vmem>>, vector<16x48xf32>
    %cst_14 = arith.constant dense<0.000000e+00> : vector<16x16xf32>
    %16 = tpu.matmul %15, %14, %cst_14 {dimension_numbers = #tpu.dot_dimension_numbers<[1], [0], [0], [1], [0, 0, 1, 1], [], []>} : vector<16x48xf32>, vector<48x16xf32>, vector<16x16xf32> -> vector<16x16xf32>
    %c0_15 = arith.constant 0 : index
    %c0_16 = arith.constant 0 : index
    %17 = vector.load %arg8[%c0_15, %c0_16] : memref<16x1xf32, #tpu.memory_space<vmem>>, vector<16x1xf32>
    %18 = vector.broadcast %17 : vector<16x1xf32> to vector<16x16xf32>
    %19 = arith.addf %16, %18 : vector<16x16xf32>
    %c0_17 = arith.constant 0 : index
    %c0_18 = arith.constant 0 : index
    %20 = vector.load %arg9[%c0_17, %c0_18] : memref<16x16xf32, #tpu.memory_space<vmem>>, vector<16x16xf32>
    tpu.vector_store %arg9[%c0_17, %c0_18], %19 {strides = array<i32>} : memref<16x16xf32, #tpu.memory_space<vmem>>, vector<16x16xf32>,
    return
  }
  func.func @transform_0(%arg0: i32, %arg1: memref<1xi32, #tpu.memory_space<smem>>) -> (i32, i32) {
    %c0_i32 = arith.constant 0 : i32
    %c0_i32_0 = arith.constant 0 : i32
    return %arg0, %c0_i32 : i32, i32
  }
  func.func @transform_1(%arg0: i32, %arg1: memref<1xi32, #tpu.memory_space<smem>>) -> (i32, i32) {
    %c0_i32 = arith.constant 0 : i32
    %c0_i32_0 = arith.constant 0 : i32
    %c0_i32_1 = arith.constant 0 : i32
    return %c0_i32, %c0_i32_0 : i32, i32
  }
  func.func @transform_2(%arg0: i32, %arg1: memref<1xi32, #tpu.memory_space<smem>>) -> (i32, i32) {
    %c0_i32 = arith.constant 0 : i32
    %c0_i32_0 = arith.constant 0 : i32
    %c0_i32_1 = arith.constant 0 : i32
    return %c0_i32, %c0_i32_0 : i32, i32
  }
  func.func @transform_3(%arg0: i32, %arg1: memref<1xi32, #tpu.memory_space<smem>>) -> (i32, i32) {
    %c0_i32 = arith.constant 0 : i32
    %c0_i32_0 = arith.constant 0 : i32
    %c0_i32_1 = arith.constant 0 : i32
    return %c0_i32, %c0_i32_0 : i32, i32
  }
  func.func @transform_4(%arg0: i32, %arg1: memref<1xi32, #tpu.memory_space<smem>>) -> (i32, i32) {
    %c0_i32 = arith.constant 0 : i32
    %c0_i32_0 = arith.constant 0 : i32
    %c0_i32_1 = arith.constant 0 : i32
    return %c0_i32, %c0_i32_0 : i32, i32
  }
  func.func @transform_5(%arg0: i32, %arg1: memref<1xi32, #tpu.memory_space<smem>>) -> (i32, i32) {
    %c0_i32 = arith.constant 0 : i32
    %c0_i32_0 = arith.constant 0 : i32
    %c0_i32_1 = arith.constant 0 : i32
    return %c0_i32, %c0_i32_0 : i32, i32
  }
  func.func @transform_6(%arg0: i32, %arg1: memref<1xi32, #tpu.memory_space<smem>>) -> (i32, i32) {
    %c0_i32 = arith.constant 0 : i32
    %c0_i32_0 = arith.constant 0 : i32
    %c0_i32_1 = arith.constant 0 : i32
    return %c0_i32, %c0_i32_0 : i32, i32
  }
  func.func @transform_7(%arg0: i32, %arg1: memref<1xi32, #tpu.memory_space<smem>>) -> (i32, i32) {
    %c0_i32 = arith.constant 0 : i32
    %c0_i32_0 = arith.constant 0 : i32
    return %c0_i32, %arg0 : i32, i32
  }
}

</mosaic_0001>

<bundles_post_ra>
// kernel: tpu_custom_call.1
= control target key start
LH: loop header
LB: loop body
LE: loop exit
PB: predicated region body
PF: predicated region fallthrough
CT: control target
= control target key end

     0   :  { %vm87_vm0 = vcmask 261120   ;;  %v678_v4 = vmov 0   ;;  %s859_s0 = inlined_call_operand.<no memory space> [shape: s32[1], index: 0, kind: input, shape index: {}]   ;;  %s860_s1 = inlined_call_operand.vmem [shape: f32[16,32], index: 1, kind: input, shape index: {}]   ;;  %s861_s2 = inlined_call_operand.vmem [shape: f32[64,32], index: 2, kind: input, shape index: {}]   ;;  %s862_s3 = inlined_call_operand.vmem [shape: f32[48,64], index: 3, kind: input, shape index: {}]   ;;  %s863_s4 = inlined_call_operand.vmem [shape: f32[16,48], index: 4, kind: input, shape index: {}]   ;;  %s864_s5 = inlined_call_operand.vmem [shape: f32[64,1], index: 5, kind: input, shape index: {}]   ;;  %s865_s6 = inlined_call_operand.vmem [shape: f32[48,1], index: 6, kind: input, shape index: {}]   ;;  %s866_s7 = inlined_call_operand.vmem [shape: f32[16,1], index: 7, kind: input, shape index: {}]   ;;  %s867_s8 = inlined_call_operand.hbm [shape: f32[16,16], index: 8, kind: output, shape index: {}]  }
   0x1   :  { %v29_v0 = vld [vmem:[%s860_s1] sm:$0xff]  ;;  %v30_v1 = vld [vmem:[%s860_s1 + $0x8] sm:$0xff]  ;;  %vm615_vm1 = vmpackc.low %vm87_vm0, %vm87_vm0  ;;  %652 = vset.pattern.permute.xlu0 %v678_v4  ;;  %653 = vset.pattern.permute.xlu1 %v678_v4 }
   0x2   :  { %v31_v2 = vld [vmem:[%s861_s2] sm:$0xff]  ;;  %v614_v3 = vpack.c.bf16 %v30_v1, %v29_v0  ;;  %v41_v6 = vld [vmem:[%s864_s5 + $0x10] sm:$0xff]  ;;  %v40_v7 = vld [vmem:[%s864_s5 + $0x8] sm:$0xff] }
   0x3   :  { %562 = vmatprep.mubr.msk.f32.mxu0 %vm87_vm0, %v31_v2  ;;  %v39_v5 = vld [vmem:[%s864_s5] sm:$0xff]  ;;  %59 = vperm.xlu1 %653, %v41_v6   ;;  %v42_v8 = vld [vmem:[%s864_s5 + $0x18] sm:$0xff]  ;;  %v32_v9 = vld [vmem:[%s861_s2 + $0x8] sm:$0xff] }
   0x4   :  { %616 = vmatprep.subr.msk.bf16.mxu0 %vm615_vm1, %v614_v3  ;;  %49 = vperm.xlu0 %652, %v39_v5   ;;  %v33_v10 = vld [vmem:[%s861_s2 + $0x10] sm:$0xff]  ;;  %v43_v11 = vld [vmem:[%s864_s5 + $0x20] sm:$0xff] }
   0x5   :  { %619 = vmatpush3.bf16.xpose.msk.msra.mxu0 %vm615_vm1, %v614_v3 }
   0x7   :  { %64 = vperm.xlu1 %653, %v42_v8  }
   0x8   :  { %54 = vperm.xlu0 %652, %v40_v7  }
   0x9   :  { %14 = vsyncpa [#allocation5], 0  ;;  %v44_v12 = vld [vmem:[%s864_s5 + $0x28] sm:$0xff]  ;;  %v34_v13 = vld [vmem:[%s861_s2 + $0x18] sm:$0xff]  ;;  %vm273_vm2 = vcmask 523264   ;;  %vm407_vm3 = vcmask 392192  }
   0xa   :  { %v35_v14 = vld [vmem:[%s861_s2 + $0x20] sm:$0xff]  ;;  %v45_v15 = vld [vmem:[%s864_s5 + $0x30] sm:$0xff]  ;;  %v46_v16 = vld [vmem:[%s864_s5 + $0x38] sm:$0xff]  ;;  %s679_s17 = smov [#allocation4]   ;;  %vm489_vm4 = vcmask 130048  }
   0xb   :  { %74 = vperm.xlu1 %653, %v44_v12   ;;  %v36_v17 = vld [vmem:[%s861_s2 + $0x28] sm:$0xff]  ;;  %v37_v18 = vld [vmem:[%s861_s2 + $0x30] sm:$0xff]  ;;  %v237_v19 = vld [vmem:[%s865_s6] sm:$0xff]  ;;  %s497_s18 = sshll.u32 %s679_s17, 4  ;;  %s498_s18 = int_to_ptr.vmem [resolvable:$true] %s497_s18 }
   0xc   :  { %563 = vmatmul.mubr.msk.f32.vlgmr.msra.gmra.mrb[0].mxu0 %vm87_vm0, %v32_v9  ;;  %69 = vperm.xlu0 %652, %v43_v11   ;;  %v238_v20 = vld [vmem:[%s865_s6 + $0x8] sm:$0xff]  ;;  %v38_v21 = vld [vmem:[%s861_s2 + $0x38] sm:$0xff]  ;;  %v239_v22 = vld [vmem:[%s865_s6 + $0x10] sm:$0xff]  ;;  %s654_s19 = scalar_lea.vmem %s498_s18, 256  ;;  %p659_p1 = scmp.lt.s32.totalorder %s498_s18, %s498_s18 }
   0xd   :  { %565 = vmatprep.mubr.msk.f32.mxu0 %vm87_vm0, %v33_v10  ;;  %v240_v23 = vld [vmem:[%s865_s6 + $0x18] sm:$0xff]  ;;  %v241_v24 = vld [vmem:[%s865_s6 + $0x20] sm:$0xff]  ;;  %v242_v25 = vld [vmem:[%s865_s6 + $0x28] sm:$0xff]  ;;  %p655_p0 = scmp.ne.s32.totalorder %s498_s18, %s654_s19  ;;  %p660_p2 = scmp.lt.s32.totalorder %s654_s19, %s654_s19 }
   0xe   :  { %v395_v26 = vld [vmem:[%s866_s7] sm:$0xff]  ;;  %v396_v27 = vld [vmem:[%s866_s7 + $0x8] sm:$0xff]  ;;  %v233_v2 = vld [vmem:[%s862_s3 + $0x10] sm:$0xff] }
   0xf   :  { %84 = vperm.xlu1 %653, %v46_v16   ;;  %v231_v28 = vld [vmem:[%s862_s3] sm:$0xff]  ;;  %v232_v1 = vld [vmem:[%s862_s3 + $0x8] sm:$0xff]  ;;  %v234_v3 = vld [vmem:[%s862_s3 + $0x18] sm:$0xff]  ;;  %p661_p3 = por %p660_p2, %p659_p1 }
  0x10   :  { %566 = vmatmul.mubr.msk.f32.gmra.mrb[2].mxu0 %vm87_vm0, %v34_v13  ;;  %79 = vperm.xlu0 %652, %v45_v15   ;;  %v235_v4 = vld [vmem:[%s862_s3 + $0x20] sm:$0xff]  ;;  %v236_v5 = vld [vmem:[%s862_s3 + $0x28] sm:$0xff] }
  0x11   :  { %568 = vmatprep.mubr.msk.f32.mxu0 %vm87_vm0, %v35_v14  ;;  %590 = vmatprep.mubr.msk.f32.mxu1 %vm273_vm2, %v231_v28  ;;  %v393_v6 = vld [vmem:[%s863_s4] sm:$0xff]  ;;  %p662_p4 = pnand %p661_p3, %p655_p0 }
  0x13   :  { %250 = vperm.xlu1 %653, %v238_v20  }
  0x14   :  { %569 = vmatmul.mubr.msk.f32.gmra.mrb[4].mxu0 %vm87_vm0, %v36_v17  ;;  %245 = vperm.xlu0 %652, %v237_v19  }
  0x15   :  { %571 = vmatprep.mubr.msk.f32.mxu0 %vm87_vm0, %v37_v18 }
  0x17   :  { %260 = vperm.xlu1 %653, %v240_v23  }
  0x18   :  { %572 = vmatmul.mubr.msk.f32.gmra.mrb[6].mxu0 %vm87_vm0, %v38_v21  ;;  %255 = vperm.xlu0 %652, %v239_v22  }
  0x19   :  { %611 = vmatprep.mubr.msk.f32.mxu0 %vm407_vm3, %v393_v6 }
  0x1b   :  { %270 = vperm.xlu1 %653, %v242_v25  }
  0x1c   :  { %265 = vperm.xlu0 %652, %v241_v24  }
  0x1f   :  { %404 = vperm.xlu1 %653, %v396_v27  }
  0x20   :  { %399 = vperm.xlu0 %652, %v395_v26  }
  0x82   :  { %v60_v30 = vpop.permute.xlu1 %59 }
  0x83   :  { %v50_v29 = vpop.permute.xlu0 %49 }
  0x86   :  { %v65_v32 = vpop.permute.xlu1 %64 }
  0x87   :  { %v55_v31 = vpop.permute.xlu0 %54 }
  0x8a   :  { %v75_v42 = vpop.permute.xlu1 %74 }
  0x8b   :  { %v70_v45 = vpop.permute.xlu0 %69 }
  0x8e   :  { %v85_v54 = vpop.permute.xlu1 %84 }
  0x8f   :  { %v80_v57 = vpop.permute.xlu0 %79 }
  0x92   :  { %v251_v7 = vpop.permute.xlu1 %250 }
  0x93   :  { %v246_v8 = vpop.permute.xlu0 %245 }
  0x96   :  { %v261_v12 = vpop.permute.xlu1 %260 }
  0x97   :  { %v256_v14 = vpop.permute.xlu0 %255 }
  0x9a   :  { %v271_v23 = vpop.permute.xlu1 %270 }
  0x9b   :  { %v266_v26 = vpop.permute.xlu0 %265 }
  0xdf   :  { %v564_v33 = vpop.f32.mrb[0].mxu0 }
  0xe0   :  { %v190_v34 = vadd.f32 %v564_v33, %v55_v31  ;;  %v184_v35 = vpop.f32.mrb[1].mxu0 }
  0xe1   :  { %v185_v36 = vadd.f32 %v184_v35, %v50_v29  ;;  %v405_v35 = vpop.permute.xlu1 %404 }
  0xe2   :  { %v224_v37 = vmax.f32 %v190_v34, 0.0  ;;  %v394_v34 = vld [vmem:[%s863_s4 + $0x8] sm:$0xff] }
  0xe3   :  { %v223_v38 = vmax.f32 %v185_v36, 0.0  ;;  %v567_v39 = vpop.f32.mrb[2].mxu0 }
  0xe4   :  { %v200_v40 = vadd.f32 %v567_v39, %v65_v32  ;;  %v194_v41 = vpop.f32.mrb[3].mxu0 }
  0xe5   :  { %v195_v43 = vadd.f32 %v194_v41, %v60_v30  ;;  %v620_v44 = vpack.c.bf16 %v224_v37, %v223_v38  ;;  %v400_v37 = vpop.permute.xlu0 %399 }
  0xe6   :  { %v226_v46 = vmax.f32 %v200_v40, 0.0 }
  0xe7   :  { %v225_v47 = vmax.f32 %v195_v43, 0.0  ;;  %v570_v48 = vpop.f32.mrb[4].mxu0  ;;  %621 = vmatprep.subr.bf16.mxu1 %v620_v44 }
  0xe8   :  { %v210_v49 = vadd.f32 %v570_v48, %v75_v42  ;;  %v204_v50 = vpop.f32.mrb[5].mxu0  ;;  %623 = vmatpush3.bf16.msra.mxu1 %v620_v44 }
  0xe9   :  { %v624_v51 = vpack.c.bf16 %v226_v46, %v225_v47  ;;  %v205_v52 = vadd.f32 %v204_v50, %v70_v45 }
  0xea   :  { %v228_v53 = vmax.f32 %v210_v49, 0.0 }
  0xeb   :  { %v227_v55 = vmax.f32 %v205_v52, 0.0  ;;  %v573_v56 = vpop.f32.mrb[6].mxu0  ;;  %625 = vmatprep.subr.bf16.mxu1 %v624_v51 }
  0xec   :  { %v220_v58 = vadd.f32 %v573_v56, %v85_v54  ;;  %v214_v59 = vpop.f32.mrb[7].mxu0  ;;  %627 = vmatpush3.bf16.msra.mxu1 %v624_v51 }
  0xed   :  { %v628_v60 = vpack.c.bf16 %v228_v53, %v227_v55  ;;  %v215_v61 = vadd.f32 %v214_v59, %v80_v57 }
  0xee   :  { %v230_v62 = vmax.f32 %v220_v58, 0.0 }
  0xef   :  { %v229_v63 = vmax.f32 %v215_v61, 0.0  ;;  %629 = vmatprep.subr.bf16.mxu1 %v628_v60 }
  0xf0   :  { %631 = vmatpush3.bf16.msra.mxu1 %v628_v60 }
  0xf1   :  { %v632_v0 = vpack.c.bf16 %v230_v62, %v229_v63 }
  0xf3   :  { %633 = vmatprep.subr.bf16.mxu1 %v632_v0 }
  0xf4   :  { %635 = vmatpush3.bf16.msra.mxu1 %v632_v0 }
  0xf7   :  { %591 = vmatmul.mubr.msk.f32.vlgmr.msra.gmra.mrb[0].mxu1 %vm273_vm2, %v232_v1 }
  0xf8   :  { %593 = vmatprep.mubr.msk.f32.mxu1 %vm273_vm2, %v233_v2 }
  0xfb   :  { %594 = vmatmul.mubr.msk.f32.gmra.mrb[2].mxu1 %vm273_vm2, %v234_v3 }
  0xfc   :  { %596 = vmatprep.mubr.msk.f32.mxu1 %vm273_vm2, %v235_v4 }
  0xff   :  { %597 = vmatmul.mubr.msk.f32.gmra.mrb[4].mxu1 %vm273_vm2, %v236_v5 }
 0x1ca   :  { %v592_v9 = vpop.f32.mrb[0].mxu1 }
 0x1cb   :  { %v364_v10 = vadd.f32 %v592_v9, %v251_v7  ;;  %v358_v11 = vpop.f32.mrb[1].mxu1 }
 0x1cc   :  { %v359_v13 = vadd.f32 %v358_v11, %v246_v8 }
 0x1cd   :  { %v388_v15 = vmax.f32 %v364_v10, 0.0 }
 0x1ce   :  { %v387_v16 = vmax.f32 %v359_v13, 0.0  ;;  %v595_v17 = vpop.f32.mrb[2].mxu1 }
 0x1cf   :  { %v374_v18 = vadd.f32 %v595_v17, %v261_v12  ;;  %v368_v19 = vpop.f32.mrb[3].mxu1 }
 0x1d0   :  { %v636_v20 = vpack.c.bf16 %v388_v15, %v387_v16  ;;  %v369_v21 = vadd.f32 %v368_v19, %v256_v14 }
 0x1d1   :  { %v390_v22 = vmax.f32 %v374_v18, 0.0 }
 0x1d2   :  { %v389_v24 = vmax.f32 %v369_v21, 0.0  ;;  %v598_v25 = vpop.f32.mrb[4].mxu1  ;;  %637 = vmatprep.subr.bf16.mxu0 %v636_v20 }
 0x1d3   :  { %v384_v27 = vadd.f32 %v598_v25, %v271_v23  ;;  %v378_v28 = vpop.f32.mrb[5].mxu1  ;;  %639 = vmatpush3.bf16.msra.mxu0 %v636_v20 }
 0x1d4   :  { %v640_v29 = vpack.c.bf16 %v390_v22, %v389_v24  ;;  %v379_v30 = vadd.f32 %v378_v28, %v266_v26 }
 0x1d5   :  { %v392_v31 = vmax.f32 %v384_v27, 0.0 }
 0x1d6   :  { %v391_v32 = vmax.f32 %v379_v30, 0.0  ;;  %641 = vmatprep.subr.bf16.mxu0 %v640_v29 }
 0x1d7   :  { %643 = vmatpush3.bf16.msra.mxu0 %v640_v29 }
 0x1d8   :  { %v644_v33 = vpack.c.bf16 %v392_v31, %v391_v32 }
 0x1da   :  { %645 = vmatprep.subr.bf16.mxu0 %v644_v33 }
 0x1db   :  { %647 = vmatpush3.bf16.msra.mxu0 %v644_v33 }
 0x1de   :  { %612 = vmatmul.mubr.msk.f32.vlgmr.msra.gmra.mrb[8].mxu0 %vm407_vm3, %v394_v34 }
 0x2b1   :  { %v613_v36 = vpop.f32.mrb[8].mxu0 }
 0x2b2   :  { %v486_v38 = vadd.f32 %v613_v36, %v405_v35  ;;  %v480_v39 = vpop.f32.mrb[9].mxu0 }
 0x2b3   :  { %v481_v40 = vadd.f32 %v480_v39, %v400_v37 }
 0x2b4   :  { %491 = vst.msk [vmem:[#allocation4 + $0x8] sm:$0xff] %vm489_vm4, %v486_v38 }
 0x2b5   :  { %490 = vst.msk [vmem:[#allocation4] sm:$0xff] %vm489_vm4, %v481_v40 }
 0x2b6   :  { %665 = shalt.err (!%p662_p4)
}
 0x2b7   :  { %s666_s21 = scalar_lea.hbm %s867_s8, 256 }
 0x2b8   :  { %p667_p5 = scmp.ne.s32.totalorder %s867_s8, %s666_s21  ;;  %p670_p6 = scmp.lt.u32.totalorder %s666_s21, %s867_s8 }
 0x2ba   :  { %p672_p7 = pnand %p670_p6, %p667_p5 }
 0x2bc   :  { %675 = shalt.err (!%p672_p7)
}
 0x2bd   :  { %s680_s24 = smov 128   ;;  %s681_s25 = smov 8  }
 0x2be   :  { %503 = dma.vmem_to_hbm [thread:$0]  %s498_s18, 256, %s867_s8, [#allocation5], %s680_s24, %s680_s24, %s681_s25  }
 0x2bf   :  { %676 = dma.done.wait [#allocation5], 256  }
 0x2c0   :  { %677 = vsyncadd [#allocation5], 4294967040 }
 0x2c1   :  { %507 = vsyncpa [#allocation5], 1 }

</bundles_post_ra>
